<compile_context>
chip_gen: v5e
topology: v5e:2x2
jax: 0.10.0
libtpu: 0.0.40
codegen_flags: <defaults>
</compile_context>

<pallas_src>
import numpy as np
import jax
import jax.numpy as jnp
from jax import lax
from jax.experimental import pallas as pl
from jax.experimental.pallas import tpu as pltpu


# --------------------------- host-side constant table -------------------------

def position_encoding_init(n_position, emb_dim):
    """Exact replica of EmbeddingNet_Pos.position_encoding_init (numpy, host-side)."""
    position_enc = np.array(
        [[pos / np.power(10000, 2 * (j // 2) / emb_dim) for j in range(emb_dim)]
         for pos in range(1, n_position + 1)])
    position_enc[1:, 0::2] = np.sin(position_enc[1:, 0::2])
    position_enc[1:, 1::2] = np.cos(position_enc[1:, 1::2])
    return jnp.asarray(position_enc, dtype=jnp.float32)          # (S, D)


# ----------------------------------- kernel ----------------------------------

def pos_enc_kernel(sol_ref, enc_ref, out_ref):
    sol = sol_ref[...]                      # (Bt, S) int32 : stacked permutations
    enc = enc_ref[...]                      # (S, D)  f32   : sinusoid table (resident)
    Bt, S = sol.shape

    # selector[b, i, p] = 1.0 iff sol[b, p] == i
    # => (selector[b] @ enc)[i, :] = enc[p*, :] with p* = visited time of node i.
    node_id = lax.broadcasted_iota(jnp.int32, (Bt, S, S), 1)
    sel = (node_id == sol[:, None, :]).astype(jnp.float32)       # (Bt, S, S)

    # Single MXU push per step; leading-dim merge reshape is layout-trivial (S % 8 == 0).
    out_ref[...] = jnp.dot(sel.reshape(Bt * S, S), enc,
                           preferred_element_type=jnp.float32)   # (Bt*S, D)


# ---------------------------------- wrapper -----------------------------------

def _round_up(x, m):
    return ((x + m - 1) // m) * m


def _choose_batch_tile(b2, s, d, budget_bytes=12 << 20):
    """VMEM-budgeted graphs-per-grid-step.

    Conservative per-graph footprint per pipeline stage (f32/int32 words):
      solutions block x2 (double-buffer) + output block x2 (double-buffer)
      + ~4x S*S one-hot/iota temporaries + one S*D dot-result copy.
    Budget ~12 MiB of block buffers per step; cap so the grid keeps >= 2 steps
    (shards across both TensorCores under "parallel"); keep the sublane dim a
    multiple of 8.
    """
    per_graph = 4 * (2 * s + 2 * s * d + 4 * s * s + s * d)
    bt = max(8, budget_bytes // per_graph)
    bt = min(bt, max(8, _round_up(-(-b2 // 2), 8)))   # keep >= 2 grid steps
    bt = min(bt, _round_up(b2, 8))                    # never exceed padded batch
    return max(8, (bt // 8) * 8)


def embedding_net_pos_forward(x, solutions, best_solutions, embedding_dim):
    """Forward of EmbeddingNet_Pos: returns (pos_enc, best_pos_enc)."""
    del x  # x is unused by the reference forward (only carries device info)
    B, S = solutions.shape
    D = embedding_dim
    enc = position_encoding_init(S, D)

    # Stack the two permutation problems -> one input stream, one output stream.
    stacked = jnp.concatenate([solutions.astype(jnp.int32),
                               best_solutions.astype(jnp.int32)], axis=0)      # (2B, S)
    B2 = 2 * B

    Bt = _choose_batch_tile(B2, S, D)
    n_steps = pl.cdiv(B2, Bt)
    B2p = n_steps * Bt
    if B2p != B2:
        # Pad with valid identity permutations; padded rows are sliced off below.
        pad = jnp.broadcast_to(jnp.arange(S, dtype=jnp.int32), (B2p - B2, S))
        stacked = jnp.concatenate([stacked, pad], axis=0)

    flops = 2 * (B2p * S) * S * D
    bytes_accessed = 4 * (B2p * S + S * D + B2p * S * D)

    out = pl.pallas_call(
        pos_enc_kernel,
        grid=(n_steps,),
        in_specs=[pl.BlockSpec((Bt, S), lambda b: (b, 0)),
                  pl.BlockSpec((S, D), lambda b: (0, 0))],       # resident, fetched once
        out_specs=pl.BlockSpec((Bt * S, D), lambda b: (b, 0)),
        out_shape=jax.ShapeDtypeStruct((B2p * S, D), jnp.float32),
        compiler_params=pltpu.CompilerParams(
            dimension_semantics=("parallel",),
            vmem_limit_bytes=32 * 1024 * 1024),
        cost_estimate=pl.CostEstimate(flops=flops, transcendentals=0,
                                      bytes_accessed=bytes_accessed),
    )(stacked, enc)

    out = out.reshape(B2p, S, D)[:B2]       # drop padded graphs (free XLA reshape/slice)
    return out[:B], out[B:]


# ----------------------------------- main --------------------------------------

if __name__ == "__main__":
    # Small shapes consistent with the module: batch=2, seq=8, node_dim=4, embed=32.
    B, S, node_dim, D = 2, 8, 4, 32

    key = jax.random.PRNGKey(0)
    kx, ks, kb = jax.random.split(key, 3)
    x = jax.random.normal(kx, (B, S, node_dim), jnp.float32)   # unused by forward (parity)
    solutions = jnp.stack(
        [jax.random.permutation(k, S) for k in jax.random.split(ks, B)]).astype(jnp.int32)
    best_solutions = jnp.stack(
        [jax.random.permutation(k, S) for k in jax.random.split(kb, B)]).astype(jnp.int32)

    pos_enc, best_pos_enc = embedding_net_pos_forward(x, solutions, best_solutions, D)
    jax.block_until_ready((pos_enc, best_pos_enc))

    # Pure-XLA reference: visited_time = argsort(permutation) (inverse permutation).
    enc = position_encoding_init(S, D)
    ref_pos = jnp.take(enc, jnp.argsort(solutions, axis=1), axis=0)
    ref_best = jnp.take(enc, jnp.argsort(best_solutions, axis=1), axis=0)

    assert pos_enc.shape == (B, S, D) and best_pos_enc.shape == (B, S, D)
    assert bool(jnp.all(jnp.isfinite(pos_enc))) and bool(jnp.all(jnp.isfinite(best_pos_enc)))
    assert bool(jnp.allclose(pos_enc, ref_pos, atol=1e-6))
    assert bool(jnp.allclose(best_pos_enc, ref_best, atol=1e-6))
    print("KERNEL_OK")
</pallas_src>

<mosaic_0001>
module attributes {stable_mosaic.version = 11 : i64} {
  func.func @pos_enc_kernel(%arg0: i32, %arg1: memref<8x8xi32, #tpu.memory_space<vmem>>, %arg2: memref<8x32xf32, #tpu.memory_space<vmem>>, %arg3: memref<64x32xf32, #tpu.memory_space<vmem>>) attributes {dimension_semantics = [#tpu.dimension_semantics<parallel>], iteration_bounds = array<i64: 1>, scalar_prefetch = 0 : i64, scratch_operands = 0 : i64, tpu.core_type = #tpu.core_type<tc>, window_params = [{transform_indices = @transform_0, window_bounds = array<i64: 8, 8>}, {pipeline_mode = #tpu.pipeline_mode<synchronous>, transform_indices = @transform_1, window_bounds = array<i64: 8, 32>}, {transform_indices = @transform_2, window_bounds = array<i64: 64, 32>}]} {
    %c0 = arith.constant 0 : index
    %c0_0 = arith.constant 0 : index
    %0 = vector.load %arg1[%c0, %c0_0] : memref<8x8xi32, #tpu.memory_space<vmem>>, vector<8x8xi32>
    %c0_1 = arith.constant 0 : index
    %c0_2 = arith.constant 0 : index
    %1 = vector.load %arg2[%c0_1, %c0_2] : memref<8x32xf32, #tpu.memory_space<vmem>>, vector<8x32xf32>
    %2 = tpu.iota {dimensions = array<i32: 1>} : vector<8x8x8xi32>
    %3 = vector.shape_cast %0 : vector<8x8xi32> to vector<8x1x8xi32>
    %4 = vector.broadcast %3 : vector<8x1x8xi32> to vector<8x8x8xi32>
    %5 = arith.cmpi eq, %2, %4 : vector<8x8x8xi32>
    %6 = arith.extui %5 : vector<8x8x8xi1> to vector<8x8x8xi32>
    %7 = arith.sitofp %6 : vector<8x8x8xi32> to vector<8x8x8xf32>
    %8 = vector.shape_cast %7 : vector<8x8x8xf32> to vector<64x8xf32>
    %cst = arith.constant dense<0.000000e+00> : vector<64x32xf32>
    %9 = tpu.matmul %8, %1, %cst {dimension_numbers = #tpu.dot_dimension_numbers<[1], [0], [0], [1], [0, 0, 1, 1], [], []>} : vector<64x8xf32>, vector<8x32xf32>, vector<64x32xf32> -> vector<64x32xf32>
    %c0_3 = arith.constant 0 : index
    %c0_4 = arith.constant 0 : index
    %10 = vector.load %arg3[%c0_3, %c0_4] : memref<64x32xf32, #tpu.memory_space<vmem>>, vector<64x32xf32>
    tpu.vector_store %arg3[%c0_3, %c0_4], %9 {strides = array<i32>} : memref<64x32xf32, #tpu.memory_space<vmem>>, vector<64x32xf32>,
    return
  }
  func.func @transform_0(%arg0: i32) -> (i32, i32) {
    %c0_i32 = arith.constant 0 : i32
    %c0_i32_0 = arith.constant 0 : i32
    return %arg0, %c0_i32 : i32, i32
  }
  func.func @transform_1(%arg0: i32) -> (i32, i32) {
    %c0_i32 = arith.constant 0 : i32
    %c0_i32_0 = arith.constant 0 : i32
    %c0_i32_1 = arith.constant 0 : i32
    return %c0_i32, %c0_i32_0 : i32, i32
  }
  func.func @transform_2(%arg0: i32) -> (i32, i32) {
    %c0_i32 = arith.constant 0 : i32
    %c0_i32_0 = arith.constant 0 : i32
    return %arg0, %c0_i32 : i32, i32
  }
}

</mosaic_0001>

<bundles_post_ra>
// kernel: tpu_custom_call.1
= control target key start
LH: loop header
LB: loop body
LE: loop exit
PB: predicated region body
PF: predicated region fallthrough
CT: control target
= control target key end

     0   :  { %7 = vsyncpa [#allocation3], 0  ;;  %s301_s0 = inlined_call_operand.hbm [shape: s32[8,8], index: 0, kind: input, shape index: {}]   ;;  %s302_s1 = inlined_call_operand.hbm [shape: f32[8,32], index: 1, kind: input, shape index: {}]   ;;  %s303_s2 = inlined_call_operand.vmem [shape: f32[64,32], index: 2, kind: output, shape index: {}]  }
   0x1   :  { %s14_s11 = sshll.u32 %s301_s0, 4  ;;  %s15_s11 = int_to_ptr.hbm [resolvable:$true] %s14_s11 }
   0x2   :  { %8 = vsyncpa [#allocation5], 0  ;;  %s237_s12 = smov [#allocation2]   ;;  %s25_s16 = sshll.u32 %s302_s1, 4  ;;  %s26_s16 = int_to_ptr.hbm [resolvable:$true] %s25_s16 }
   0x3   :  { %s16_s13 = sshll.u32 %s237_s12, 4  ;;  %s238_s17 = smov [#allocation4]   ;;  %s17_s13 = int_to_ptr.vmem [resolvable:$true] %s16_s13 }
   0x4   :  { %19 = dma.hbm_to_vmem [thread:$0]  %s15_s11, 128, %s17_s13, [#allocation3]  }
   0x5   :  { %s27_s18 = sshll.u32 %s238_s17, 4  ;;  %s28_s18 = int_to_ptr.vmem [resolvable:$true] %s27_s18 }
   0x6   :  { %30 = dma.hbm_to_vmem [thread:$0]  %s26_s16, 128, %s28_s18, [#allocation5]  }
   0x7   :  { %233 = dma.done.wait [#allocation3], 128  }
   0x8   :  { %234 = vsyncadd [#allocation3], 4294967168 }
   0x9   :  { %235 = dma.done.wait [#allocation5], 128  }
   0xa   :  { %236 = vsyncadd [#allocation5], 4294967168  ;;  %v41_v0 = vlaneseq  ;;  %v40_v1 = vld [vmem:[#allocation4] sm:$0xff]  ;;  %v39_v2 = vld [vmem:[#allocation2] sm:$0xff]  ;;  %vm82_vm1 = vcmask 64512   ;;  %v239_v15 = vmov 0.0  }
   0xb   :  { %180 = vmatpush.msra.mxu2 %v40_v1  ;;  %181 = vmatpush.msra.mxu3 %v40_v1  ;;  %v46_v4 = vrot.slane %v39_v2, 4  ;;  %v48_v5 = vrot.slane %v39_v2, 6  ;;  %v50_v6 = vperm.slane %v39_v2, 0  ;;  %v44_v7 = vrot.slane %v39_v2, 2 }
   0xc   :  { %v42_v3 = vshrl.u32 %v41_v0, 7  ;;  %122 = vmatpush.msra.mxu0 %v40_v1  ;;  %179 = vmatpush.msra.mxu1 %v40_v1  ;;  %v47_v8 = vrot.slane %v39_v2, 5  ;;  %v49_v9 = vrot.slane %v39_v2, 7  ;;  %v43_v10 = vrot.slane %v39_v2, 1 }
   0xd   :  { %v45_v11 = vrot.slane %v39_v2, 3  ;;  %v54_v12 = vperm.slane %v46_v4, 0  ;;  %v56_v13 = vperm.slane %v48_v5, 0  ;;  %v52_v14 = vperm.slane %v44_v7, 0 }
   0xe   :  { %vm58_vm0 = vcmp.eq.s32.totalorder %v42_v3, %v50_v6  ;;  %v55_v17 = vperm.slane %v47_v8, 0  ;;  %v51_v18 = vperm.slane %v43_v10, 0  ;;  %v57_v19 = vperm.slane %v49_v9, 0 }
   0xf   :  { %v163_v16 = vsel %vm58_vm0, 1.0, %v239_v15  ;;  %vm62_vm2 = vcmp.eq.s32.totalorder %v42_v3, %v54_v12  ;;  %vm64_vm3 = vcmp.eq.s32.totalorder %v42_v3, %v56_v13  ;;  %vm60_vm4 = vcmp.eq.s32.totalorder %v42_v3, %v52_v14 }
  0x10   :  { %171 = vmatmul.msk.f32.vlgmr.msra.gmra.mxu0 %vm82_vm1, %v163_v16  ;;  %v167_v20 = vsel %vm62_vm2, 1.0, %v239_v15  ;;  %v169_v21 = vsel %vm64_vm3, 1.0, %v239_v15  ;;  %v165_v22 = vsel %vm60_vm4, 1.0, %v239_v15  ;;  %v53_v23 = vperm.slane %v45_v11, 0 }
  0x11   :  { %175 = vmatmul.msk.f32.vlgmr.msra.gmra.mxu2 %vm82_vm1, %v167_v20  ;;  %177 = vmatmul.msk.f32.vlgmr.msra.gmra.mxu3 %vm82_vm1, %v169_v21  ;;  %vm59_vm5 = vcmp.eq.s32.totalorder %v42_v3, %v51_v18  ;;  %vm63_vm6 = vcmp.eq.s32.totalorder %v42_v3, %v55_v17  ;;  %vm65_vm7 = vcmp.eq.s32.totalorder %v42_v3, %v57_v19  ;;  %vm148_vm9 = vcmask 261120  }
  0x12   :  { %173 = vmatmul.msk.f32.vlgmr.msra.gmra.mxu1 %vm82_vm1, %v165_v22  ;;  %v164_v24 = vsel %vm59_vm5, 1.0, %v239_v15  ;;  %vm61_vm8 = vcmp.eq.s32.totalorder %v42_v3, %v53_v23  ;;  %v168_v25 = vsel %vm63_vm6, 1.0, %v239_v15  ;;  %v170_v26 = vsel %vm65_vm7, 1.0, %v239_v15 }
  0x13   :  { %v166_v27 = vsel %vm61_vm8, 1.0, %v239_v15 }
  0x18   :  { %172 = vmatmul.msk.f32.gmra.mxu0 %vm82_vm1, %v164_v24 }
  0x19   :  { %176 = vmatmul.msk.f32.gmra.mxu2 %vm82_vm1, %v168_v25  ;;  %178 = vmatmul.msk.f32.gmra.mxu3 %vm82_vm1, %v170_v26 }
  0x1a   :  { %174 = vmatmul.msk.f32.gmra.mxu1 %vm82_vm1, %v166_v27 }
  0x8d   :  { %v124_v28 = vpop.f32.mrf.mxu0 }
  0x8e   :  { %149 = vst.msk [vmem:[%s303_s2] sm:$0xff] %vm148_vm9, %v124_v28 }
  0x8f   :  { %v130_v29 = vpop.f32.mrf.mxu1 }
  0x90   :  { %151 = vst.msk [vmem:[%s303_s2 + $0x10] sm:$0xff] %vm148_vm9, %v130_v29 }
  0x94   :  { %v136_v30 = vpop.f32.mrf.mxu2  ;;  %v142_v31 = vpop.f32.mrf.mxu3 }
  0x95   :  { %153 = vst.msk [vmem:[%s303_s2 + $0x20] sm:$0xff] %vm148_vm9, %v136_v30  ;;  %v127_v32 = vpop.f32.mrf.mxu0 }
  0x96   :  { %155 = vst.msk [vmem:[%s303_s2 + $0x30] sm:$0xff] %vm148_vm9, %v142_v31 }
  0x97   :  { %150 = vst.msk [vmem:[%s303_s2 + $0x8] sm:$0xff] %vm148_vm9, %v127_v32  ;;  %v133_v33 = vpop.f32.mrf.mxu1 }
  0x98   :  { %152 = vst.msk [vmem:[%s303_s2 + $0x18] sm:$0xff] %vm148_vm9, %v133_v33 }
  0x9c   :  { %v139_v34 = vpop.f32.mrf.mxu2  ;;  %v145_v35 = vpop.f32.mrf.mxu3 }
  0x9d   :  { %154 = vst.msk [vmem:[%s303_s2 + $0x28] sm:$0xff] %vm148_vm9, %v139_v34 }
  0x9e   :  { %156 = vst.msk [vmem:[%s303_s2 + $0x38] sm:$0xff] %vm148_vm9, %v145_v35 }
  0x9f   :  { %161 = vsyncpa [#allocation3], 1 }
  0xa0   :  { %162 = vsyncpa [#allocation5], 1 }

</bundles_post_ra>
